<compile_context>
chip_gen: v6e
topology: v6e:2x2x1
jax: 0.10.0
libtpu: 0.0.40
codegen_flags: <defaults>
</compile_context>

<pallas_src>
import jax
import jax.numpy as jnp
from jax.experimental import pallas as pl
from jax.experimental.pallas import tpu as pltpu

INPUT_SIZE = 18   # Temp, Pres, gaseous concentrations
H1 = 16
H2 = 16
OUT = 256         # LW emission g-points

_TILE_B_CAP = 4096                     # keeps footprint <= ~18 MiB (see header)
_DEFAULT_VMEM_LIMIT = 32 * 1024 * 1024 # safe scoped-VMEM request on v5e/v6e/v7x


def _round_up(x, m):
    return (x + m - 1) // m * m


def _softsign(h):
    # softsign(h) = h / (1 + |h|).
    # Reciprocal goes to the EUP slot (approx=True) so VALU stays free; one
    # Newton-Raphson step (2 extra VPU ops per vreg, hidden under the output
    # writeback DMA) restores near-f32 accuracy.
    d = 1.0 + jnp.abs(h)
    r = pl.reciprocal(d, approx=True)
    r = r * (2.0 - d * r)
    return h * r


def lw_ems_kernel(x_ref, w1_ref, b1_ref, w2_ref, b2_ref, w3_ref, b3_ref, o_ref):
    # x_ref: (tile_b, INPUT_SIZE) tile of the batch; weights resident in VMEM.
    x = x_ref[...]
    h = jnp.dot(x, w1_ref[...], preferred_element_type=jnp.float32) + b1_ref[...]
    h = _softsign(h)
    h = jnp.dot(h, w2_ref[...], preferred_element_type=jnp.float32) + b2_ref[...]
    h = _softsign(h)
    o = jnp.dot(h, w3_ref[...], preferred_element_type=jnp.float32) + b3_ref[...]
    o_ref[...] = o.astype(o_ref.dtype)


def lw_ems_forward(x, params, *, tile_b=_TILE_B_CAP, out_dtype=jnp.bfloat16,
                   vmem_limit_bytes=_DEFAULT_VMEM_LIMIT):
    """x: (B, INPUT_SIZE) float32. params: dict of w1,b1,w2,b2,w3,b3.

    tile_b:    rows per grid step (rounded to the sublane multiple: 8 for f32
               output, 16 for bf16), hard-capped at 4096 and clamped so the
               grid has >=2 steps when B allows (megacore on v7x).
    out_dtype: jnp.bfloat16 (default) halves the dominant output HBM writeback;
               use jnp.float32 for full-precision output. Accumulation is f32
               either way.
    """
    B, F = x.shape
    assert F == INPUT_SIZE

    out_itemsize = jnp.dtype(out_dtype).itemsize
    sublane = 8 if out_itemsize >= 4 else 16

    # --- tile_b selection -------------------------------------------------
    tile_b = min(int(tile_b), _TILE_B_CAP)
    B_rounded = _round_up(B, sublane)
    tile_b = min(tile_b, B_rounded)
    if B_rounded >= 2 * sublane:
        # ensure at least 2 grid blocks so both v7x TensorCores get work
        tile_b = min(tile_b, _round_up(-(-B_rounded // 2), sublane))
    tile_b = max(sublane, _round_up(tile_b, sublane))

    # Ragged last block is handled by Pallas directly: no padding of x, no
    # post-slice copy of the (B, OUT) output.
    grid = (pl.cdiv(B, tile_b),)

    w1, b1 = params["w1"], params["b1"]
    w2, b2 = params["w2"], params["b2"]
    w3, b3 = params["w3"], params["b3"]

    # Weights/biases are grid-invariant: full-array blocks, single-buffered
    # (no pointless double-buffer allocation / per-step DMA descriptors).
    def const_spec(arr):
        zeros = (0,) * arr.ndim
        return pl.BlockSpec(arr.shape, lambda i: zeros,
                            pipeline_mode=pl.Buffered(buffer_count=1))

    weight_bytes = sum(int(a.size) * jnp.dtype(a.dtype).itemsize
                       for a in (w1, b1, w2, b2, w3, b3))
    cost = pl.CostEstimate(
        flops=2 * B * (INPUT_SIZE * H1 + H1 * H2 + H2 * OUT),
        transcendentals=B * (H1 + H2),   # one EUP reciprocal per softsign elem
        bytes_accessed=B * (INPUT_SIZE * 4 + OUT * out_itemsize) + weight_bytes,
    )

    # TODO(synk): if a downstream consumer reduces over the 256 g-points, fuse
    # it here so the (B,256) tensor never hits HBM (biggest possible win).
    out = pl.pallas_call(
        lw_ems_kernel,
        out_shape=jax.ShapeDtypeStruct((B, OUT), out_dtype),
        grid_spec=pltpu.PrefetchScalarGridSpec(
            num_scalar_prefetch=0,
            grid=grid,
            in_specs=[
                pl.BlockSpec((tile_b, INPUT_SIZE), lambda i: (i, 0)),  # x (pipelined)
                const_spec(w1), const_spec(b1),
                const_spec(w2), const_spec(b2),
                const_spec(w3), const_spec(b3),
            ],
            out_specs=pl.BlockSpec((tile_b, OUT), lambda i: (i, 0)),   # lane-dense 256
        ),
        compiler_params=pltpu.CompilerParams(
            dimension_semantics=("parallel",),   # megacore sharding on v7x
            vmem_limit_bytes=vmem_limit_bytes,
        ),
        cost_estimate=cost,
    )(x, w1, b1, w2, b2, w3, b3)

    return out


def init_params(key):
    """Deterministic init mimicking nn.Linear default (uniform +/- 1/sqrt(fan_in))."""
    ks = jax.random.split(key, 6)

    def linear(kw, kb, fan_in, fan_out):
        bound = 1.0 / jnp.sqrt(jnp.float32(fan_in))
        w = jax.random.uniform(kw, (fan_in, fan_out), jnp.float32, -bound, bound)
        b = jax.random.uniform(kb, (1, fan_out), jnp.float32, -bound, bound)
        return w, b

    w1, b1 = linear(ks[0], ks[1], INPUT_SIZE, H1)
    w2, b2 = linear(ks[2], ks[3], H1, H2)
    w3, b3 = linear(ks[4], ks[5], H2, OUT)
    return {"w1": w1, "b1": b1, "w2": w2, "b2": b2, "w3": w3, "b3": b3}


def lw_ems_reference(x, params):
    h = x @ params["w1"] + params["b1"]
    h = h / (1.0 + jnp.abs(h))
    h = h @ params["w2"] + params["b2"]
    h = h / (1.0 + jnp.abs(h))
    return h @ params["w3"] + params["b3"]


if __name__ == "__main__":
    key = jax.random.PRNGKey(0)
    k_x, k_p = jax.random.split(key)
    params = init_params(k_p)

    # 1) Small batch, f32 output. NR-refined reciprocal -> tight tolerance.
    B = 8
    x = jax.random.normal(k_x, (B, INPUT_SIZE), jnp.float32)
    out = jax.block_until_ready(lw_ems_forward(x, params, out_dtype=jnp.float32))
    ref = lw_ems_reference(x, params)
    assert out.shape == (B, OUT), out.shape
    assert jnp.allclose(out, ref, atol=1e-3, rtol=1e-3), "mismatch vs reference (B=8, f32)"

    # 2) Ragged grid (B not a multiple of tile_b), default bf16 fast path.
    B2 = 200
    x2 = jax.random.normal(jax.random.PRNGKey(1), (B2, INPUT_SIZE), jnp.float32)
    out2 = jax.block_until_ready(lw_ems_forward(x2, params, tile_b=64))
    ref2 = lw_ems_reference(x2, params)
    assert out2.shape == (B2, OUT), out2.shape
    assert out2.dtype == jnp.bfloat16
    assert jnp.allclose(out2.astype(jnp.float32), ref2, atol=4e-2, rtol=4e-2), \
        "mismatch vs reference (B=200, bf16)"

    # 3) Same ragged grid with f32 output.
    out3 = jax.block_until_ready(
        lw_ems_forward(x2, params, tile_b=64, out_dtype=jnp.float32))
    assert out3.shape == (B2, OUT), out3.shape
    assert jnp.allclose(out3, ref2, atol=1e-3, rtol=1e-3), \
        "mismatch vs reference (B=200, f32)"

    print("KERNEL_OK")
</pallas_src>

<mosaic_0001>
module attributes {stable_mosaic.version = 11 : i64} {
  func.func @lw_ems_kernel(%arg0: i32, %arg1: memref<8x18xf32, #tpu.memory_space<vmem>>, %arg2: memref<18x16xf32, #tpu.memory_space<vmem>>, %arg3: memref<1x16xf32, #tpu.memory_space<vmem>>, %arg4: memref<16x16xf32, #tpu.memory_space<vmem>>, %arg5: memref<1x16xf32, #tpu.memory_space<vmem>>, %arg6: memref<16x256xf32, #tpu.memory_space<vmem>>, %arg7: memref<1x256xf32, #tpu.memory_space<vmem>>, %arg8: memref<8x256xf32, #tpu.memory_space<vmem>>) attributes {dimension_semantics = [#tpu.dimension_semantics<parallel>], iteration_bounds = array<i64: 1>, scalar_prefetch = 0 : i64, scratch_operands = 0 : i64, tpu.core_type = #tpu.core_type<tc>, window_params = [{transform_indices = @transform_0, window_bounds = array<i64: 8, 18>}, {pipeline_mode = #tpu.pipeline_mode<synchronous>, transform_indices = @transform_1, window_bounds = array<i64: 18, 16>}, {pipeline_mode = #tpu.pipeline_mode<synchronous>, transform_indices = @transform_2, window_bounds = array<i64: 1, 16>}, {pipeline_mode = #tpu.pipeline_mode<synchronous>, transform_indices = @transform_3, window_bounds = array<i64: 16, 16>}, {pipeline_mode = #tpu.pipeline_mode<synchronous>, transform_indices = @transform_4, window_bounds = array<i64: 1, 16>}, {pipeline_mode = #tpu.pipeline_mode<synchronous>, transform_indices = @transform_5, window_bounds = array<i64: 16, 256>}, {pipeline_mode = #tpu.pipeline_mode<synchronous>, transform_indices = @transform_6, window_bounds = array<i64: 1, 256>}, {transform_indices = @transform_7, window_bounds = array<i64: 8, 256>}]} {
    %c0 = arith.constant 0 : index
    %c0_0 = arith.constant 0 : index
    %0 = vector.load %arg1[%c0, %c0_0] : memref<8x18xf32, #tpu.memory_space<vmem>>, vector<8x18xf32>
    %c0_1 = arith.constant 0 : index
    %c0_2 = arith.constant 0 : index
    %1 = vector.load %arg2[%c0_1, %c0_2] : memref<18x16xf32, #tpu.memory_space<vmem>>, vector<18x16xf32>
    %cst = arith.constant dense<0.000000e+00> : vector<8x16xf32>
    %2 = tpu.matmul %0, %1, %cst {dimension_numbers = #tpu.dot_dimension_numbers<[1], [0], [0], [1], [0, 0, 1, 1], [], []>} : vector<8x18xf32>, vector<18x16xf32>, vector<8x16xf32> -> vector<8x16xf32>
    %c0_3 = arith.constant 0 : index
    %c0_4 = arith.constant 0 : index
    %3 = vector.load %arg3[%c0_3, %c0_4] : memref<1x16xf32, #tpu.memory_space<vmem>>, vector<1x16xf32>
    %4 = vector.broadcast %3 : vector<1x16xf32> to vector<8x16xf32>
    %5 = arith.addf %2, %4 : vector<8x16xf32>
    %6 = math.absf %5 : vector<8x16xf32>
    %cst_5 = arith.constant 1.000000e+00 : f32
    %7 = vector.broadcast %cst_5 : f32 to vector<8x16xf32>
    %8 = arith.addf %7, %6 : vector<8x16xf32>
    %9 = tpu.reciprocal %8 {approx = true} : vector<8x16xf32> -> vector<8x16xf32>
    %10 = arith.mulf %8, %9 : vector<8x16xf32>
    %cst_6 = arith.constant 2.000000e+00 : f32
    %11 = vector.broadcast %cst_6 : f32 to vector<8x16xf32>
    %12 = arith.subf %11, %10 : vector<8x16xf32>
    %13 = arith.mulf %9, %12 : vector<8x16xf32>
    %14 = arith.mulf %5, %13 : vector<8x16xf32>
    %c0_7 = arith.constant 0 : index
    %c0_8 = arith.constant 0 : index
    %15 = vector.load %arg4[%c0_7, %c0_8] : memref<16x16xf32, #tpu.memory_space<vmem>>, vector<16x16xf32>
    %cst_9 = arith.constant dense<0.000000e+00> : vector<8x16xf32>
    %16 = tpu.matmul %14, %15, %cst_9 {dimension_numbers = #tpu.dot_dimension_numbers<[1], [0], [0], [1], [0, 0, 1, 1], [], []>} : vector<8x16xf32>, vector<16x16xf32>, vector<8x16xf32> -> vector<8x16xf32>
    %c0_10 = arith.constant 0 : index
    %c0_11 = arith.constant 0 : index
    %17 = vector.load %arg5[%c0_10, %c0_11] : memref<1x16xf32, #tpu.memory_space<vmem>>, vector<1x16xf32>
    %18 = vector.broadcast %17 : vector<1x16xf32> to vector<8x16xf32>
    %19 = arith.addf %16, %18 : vector<8x16xf32>
    %20 = math.absf %19 : vector<8x16xf32>
    %cst_12 = arith.constant 1.000000e+00 : f32
    %21 = vector.broadcast %cst_12 : f32 to vector<8x16xf32>
    %22 = arith.addf %21, %20 : vector<8x16xf32>
    %23 = tpu.reciprocal %22 {approx = true} : vector<8x16xf32> -> vector<8x16xf32>
    %24 = arith.mulf %22, %23 : vector<8x16xf32>
    %cst_13 = arith.constant 2.000000e+00 : f32
    %25 = vector.broadcast %cst_13 : f32 to vector<8x16xf32>
    %26 = arith.subf %25, %24 : vector<8x16xf32>
    %27 = arith.mulf %23, %26 : vector<8x16xf32>
    %28 = arith.mulf %19, %27 : vector<8x16xf32>
    %c0_14 = arith.constant 0 : index
    %c0_15 = arith.constant 0 : index
    %29 = vector.load %arg6[%c0_14, %c0_15] : memref<16x256xf32, #tpu.memory_space<vmem>>, vector<16x256xf32>
    %cst_16 = arith.constant dense<0.000000e+00> : vector<8x256xf32>
    %30 = tpu.matmul %28, %29, %cst_16 {dimension_numbers = #tpu.dot_dimension_numbers<[1], [0], [0], [1], [0, 0, 1, 1], [], []>} : vector<8x16xf32>, vector<16x256xf32>, vector<8x256xf32> -> vector<8x256xf32>
    %c0_17 = arith.constant 0 : index
    %c0_18 = arith.constant 0 : index
    %31 = vector.load %arg7[%c0_17, %c0_18] : memref<1x256xf32, #tpu.memory_space<vmem>>, vector<1x256xf32>
    %32 = vector.broadcast %31 : vector<1x256xf32> to vector<8x256xf32>
    %33 = arith.addf %30, %32 : vector<8x256xf32>
    %c0_19 = arith.constant 0 : index
    %c0_20 = arith.constant 0 : index
    %34 = vector.load %arg8[%c0_19, %c0_20] : memref<8x256xf32, #tpu.memory_space<vmem>>, vector<8x256xf32>
    tpu.vector_store %arg8[%c0_19, %c0_20], %33 {strides = array<i32>} : memref<8x256xf32, #tpu.memory_space<vmem>>, vector<8x256xf32>,
    return
  }
  func.func @transform_0(%arg0: i32) -> (i32, i32) {
    %c0_i32 = arith.constant 0 : i32
    %c0_i32_0 = arith.constant 0 : i32
    return %arg0, %c0_i32 : i32, i32
  }
  func.func @transform_1(%arg0: i32) -> (i32, i32) {
    %c0_i32 = arith.constant 0 : i32
    %c0_i32_0 = arith.constant 0 : i32
    %c0_i32_1 = arith.constant 0 : i32
    return %c0_i32, %c0_i32_0 : i32, i32
  }
  func.func @transform_2(%arg0: i32) -> (i32, i32) {
    %c0_i32 = arith.constant 0 : i32
    %c0_i32_0 = arith.constant 0 : i32
    %c0_i32_1 = arith.constant 0 : i32
    return %c0_i32, %c0_i32_0 : i32, i32
  }
  func.func @transform_3(%arg0: i32) -> (i32, i32) {
    %c0_i32 = arith.constant 0 : i32
    %c0_i32_0 = arith.constant 0 : i32
    %c0_i32_1 = arith.constant 0 : i32
    return %c0_i32, %c0_i32_0 : i32, i32
  }
  func.func @transform_4(%arg0: i32) -> (i32, i32) {
    %c0_i32 = arith.constant 0 : i32
    %c0_i32_0 = arith.constant 0 : i32
    %c0_i32_1 = arith.constant 0 : i32
    return %c0_i32, %c0_i32_0 : i32, i32
  }
  func.func @transform_5(%arg0: i32) -> (i32, i32) {
    %c0_i32 = arith.constant 0 : i32
    %c0_i32_0 = arith.constant 0 : i32
    %c0_i32_1 = arith.constant 0 : i32
    return %c0_i32, %c0_i32_0 : i32, i32
  }
  func.func @transform_6(%arg0: i32) -> (i32, i32) {
    %c0_i32 = arith.constant 0 : i32
    %c0_i32_0 = arith.constant 0 : i32
    %c0_i32_1 = arith.constant 0 : i32
    return %c0_i32, %c0_i32_0 : i32, i32
  }
  func.func @transform_7(%arg0: i32) -> (i32, i32) {
    %c0_i32 = arith.constant 0 : i32
    %c0_i32_0 = arith.constant 0 : i32
    return %arg0, %c0_i32 : i32, i32
  }
}

</mosaic_0001>

<bundles_post_ra>
// kernel: tpu_custom_call.1
= control target key start
LH: loop header
LB: loop body
LE: loop exit
PB: predicated region body
PF: predicated region fallthrough
CT: control target
= control target key end

     0   :  { %12 = vsyncpa [#allocation3], 0  ;;  %s571_s0 = inlined_call_operand.hbm [shape: f32[8,18], index: 0, kind: input, shape index: {}]   ;;  %s572_s1 = inlined_call_operand.vmem [shape: f32[18,16], index: 1, kind: input, shape index: {}]   ;;  %s573_s2 = inlined_call_operand.hbm [shape: f32[1,16], index: 2, kind: input, shape index: {}]   ;;  %s574_s3 = inlined_call_operand.vmem [shape: f32[16,16], index: 3, kind: input, shape index: {}]   ;;  %s575_s4 = inlined_call_operand.hbm [shape: f32[1,16], index: 4, kind: input, shape index: {}]   ;;  %s576_s5 = inlined_call_operand.vmem [shape: f32[16,256], index: 5, kind: input, shape index: {}]   ;;  %s577_s6 = inlined_call_operand.vmem [shape: f32[1,256], index: 6, kind: input, shape index: {}]   ;;  %s578_s7 = inlined_call_operand.hbm [shape: f32[8,256], index: 7, kind: output, shape index: {}]  }
   0x1   :  { %13 = vsyncpa [#allocation6], 0 }
   0x2   :  { %14 = vsyncpa [#allocation4], 0  ;;  %s481_s24 = smov [#allocation5]   ;;  %s482_s26 = smov [#allocation2]  }
   0x3   :  { %s33_s25 = sshll.u32 %s481_s24, 4  ;;  %s21_s27 = sshll.u32 %s482_s26, 4  ;;  %s34_s25 = int_to_ptr.vmem [resolvable:$true] %s33_s25  ;;  %s22_s27 = int_to_ptr.vmem [resolvable:$true] %s21_s27 }
   0x4   :  { %s403_s28 = scalar_lea.vmem %s34_s25, 16  ;;  %s407_s29 = scalar_lea.vmem %s34_s25, 32 }
   0x5   :  { %p404_p0 = scmp.ne.s32.totalorder %s34_s25, %s403_s28  ;;  %p408_p1 = scmp.lt.s32.totalorder %s34_s25, %s34_s25 }
   0x6   :  { %p409_p2 = scmp.lt.s32.totalorder %s407_s29, %s403_s28 }
   0x8   :  { %p410_p3 = por %p409_p2, %p408_p1 }
   0xa   :  { %p411_p4 = pnand %p410_p3, %p404_p0 }
   0xc   :  { %414 = shalt.err (!%p411_p4)
}
   0xd   :  { %36 = dma.hbm_to_vmem [thread:$0]  %s573_s2, 16, %s34_s25, [#allocation6]  }
   0xe   :  { %s423_s9 = scalar_lea.vmem %s22_s27, 128  ;;  %p428_p6 = scmp.lt.s32.totalorder %s22_s27, %s22_s27 }
   0xf   :  { %p424_p5 = scmp.ne.s32.totalorder %s22_s27, %s423_s9  ;;  %p429_p7 = scmp.lt.s32.totalorder %s423_s9, %s423_s9 }
  0x11   :  { %p430_p8 = por %p429_p7, %p428_p6 }
  0x13   :  { %p431_p9 = pnand %p430_p8, %p424_p5 }
  0x15   :  { %434 = shalt.err (!%p431_p9)
}
  0x16   :  { %24 = dma.hbm_to_vmem [thread:$0]  %s571_s0, 128, %s22_s27, [#allocation3]  }
  0x17   :  { %s483_s12 = smov [#allocation7]  }
  0x18   :  { %s45_s13 = sshll.u32 %s483_s12, 4  ;;  %s46_s13 = int_to_ptr.vmem [resolvable:$true] %s45_s13 }
  0x19   :  { %s443_s14 = scalar_lea.vmem %s46_s13, 16  ;;  %s447_s15 = scalar_lea.vmem %s46_s13, 32 }
  0x1a   :  { %p444_p10 = scmp.ne.s32.totalorder %s46_s13, %s443_s14  ;;  %p448_p11 = scmp.lt.s32.totalorder %s46_s13, %s46_s13 }
  0x1b   :  { %p449_p12 = scmp.lt.s32.totalorder %s447_s15, %s443_s14 }
  0x1d   :  { %p450_p13 = por %p449_p12, %p448_p11 }
  0x1f   :  { %p451_p0 = pnand %p450_p13, %p444_p10 }
  0x21   :  { %454 = shalt.err (!%p451_p0)
}
  0x22   :  { %48 = dma.hbm_to_vmem [thread:$0]  %s575_s4, 16, %s46_s13, [#allocation6]  }
  0x23   :  { %475 = dma.done.wait [#allocation3], 128  }
  0x24   :  { %476 = vsyncadd [#allocation3], 4294967168 }
  0x25   :  { %477 = dma.done.wait [#allocation6], 32  }
  0x26   :  { %478 = vsyncadd [#allocation6], 4294967264  ;;  %v484_v0 = vmov 0.0   ;;  %vm485_vm0 = vmmov 0   ;;  %vm77_vm1 = vcmask 1041408   ;;  %v64_v2 = vld [vmem:[%s572_s1 + $0x8] sm:$0xff]  ;;  %v254_v33 = vlaneseq }
  0x27   :  { %369 = vmatprep.subr.mxu0 %v484_v0  ;;  %375 = vmatprep.mubr.msk.f32.mxu0 %vm485_vm0, %v484_v0  ;;  %v65_v1 = vld [vmem:[%s572_s1 + $0x10] sm:$0x3]  ;;  %v63_v3 = vld [vmem:[%s572_s1] sm:$0xff]  ;;  %vm73_vm2 = vcmask 146432   ;;  %v159_v5 = vld [vmem:[%s574_s3 + $0x8] sm:$0xff]  ;;  %vm167_vm3 = vcmask 130048  }
  0x28   :  { %378 = vmatprep.subr.mxu1 %v484_v0  ;;  %382 = vmatprep.mubr.msk.f32.mxu1 %vm485_vm0, %v484_v0  ;;  %v62_v4 = vld [vmem:[#allocation2] sm:$0xff]  ;;  %v356_v7 = vld [vmem:[#allocation5] ss:$0 sm:$0xff]  ;;  %v251_v18 = vld [vmem:[%s576_s5 + $0x18] sm:$0xff]  ;;  %v255_v34 = vshrl.u32 %v254_v33, 7  ;;  %s486_s9 = smov [#allocation8]  }
  0x29   :  { %370 = vmatpush3.msk.msra.mxu0 %vm77_vm1, %v65_v1  ;;  %379 = vmatpush3.msra.mxu1 %v159_v5  ;;  %v158_v6 = vld [vmem:[%s574_s3] sm:$0xff]  ;;  %v250_v19 = vld [vmem:[%s576_s5 + $0x10] sm:$0xff]  ;;  %v249_v20 = vld [vmem:[%s576_s5 + $0x8] sm:$0xff]  ;;  %s346_s10 = sshll.u32 %s486_s9, 4  ;;  %s347_s10 = int_to_ptr.vmem [resolvable:$true] %s346_s10 }
  0x2a   :  { %371 = vmatprep.subr.mxu0 %v484_v0  ;;  %380 = vmatprep.subr.mxu1 %v484_v0  ;;  %v248_v21 = vld [vmem:[%s576_s5] sm:$0xff]  ;;  %v359_v22 = vld [vmem:[#allocation7] ss:$0 sm:$0xff]  ;;  %v256_v35 = vsub.s32 0, %v255_v34  ;;  %v260_v37 = vsub.s32 1, %v255_v34  ;;  %s455_s11 = scalar_lea.vmem %s347_s10, 256  ;;  %p460_p2 = scmp.lt.s32.totalorder %s347_s10, %s347_s10 }
  0x2b   :  { %372 = vmatpush3.msra.mxu0 %v64_v2  ;;  %381 = vmatpush3.msra.mxu1 %v158_v6  ;;  %v252_v36 = vld [vmem:[%s577_s6] sm:$0x3]  ;;  %p456_p1 = scmp.ne.s32.totalorder %s347_s10, %s455_s11  ;;  %p461_p3 = scmp.lt.s32.totalorder %s455_s11, %s455_s11 }
  0x2c   :  { %373 = vmatprep.subr.mxu0 %v484_v0  ;;  %295 = vmatprep.subr.mxu1 %v251_v18  ;;  %v257_v38 = vrot.slane %v252_v36, %v256_v35  ;;  %v261_v39 = vrot.slane %v252_v36, %v260_v37 }
  0x2d   :  { %374 = vmatpush3.msra.mxu0 %v63_v3  ;;  %p462_p4 = por %p461_p3, %p460_p2 }
  0x2e   :  { %376 = vmatmul.mubr.msk.f32.vlgmr.msra.gmra.mxu0 %vm73_vm2, %v62_v4 }
  0x2f   :  { %p463_p5 = pnand %p462_p4, %p456_p1 }
  0xee   :  { %v147_v8 = vpop.f32.mrf.mxu0 }
  0xef   :  { %v148_v9 = vadd.f32 %v356_v7, %v147_v8 }
  0xf0   :  { %v377_v10 = vpop.f32.mrf.mxu0 }
  0xf1   :  { %v151_v11 = vand.u32 2147483647, %v148_v9 }
  0xf3   :  { %v152_v12 = vadd.f32 1.0, %v151_v11 }
  0xf5   :  { %391 = vrcp.f32 %v152_v12 }
 0x102   :  { %v392_v13 = vpop.eup %391 }
 0x103   :  { %v154_v14 = vmul.f32 %v392_v13, %v152_v12 }
 0x105   :  { %v155_v15 = vsub.f32 2.0, %v154_v14 }
 0x107   :  { %v156_v16 = vmul.f32 %v392_v13, %v155_v15 }
 0x109   :  { %v157_v17 = vmul.f32 %v156_v16, %v148_v9 }
 0x10b   :  { %383 = vmatmul.mubr.msk.f32.vlgmr.msra.gmra.mxu1 %vm167_vm3, %v157_v17 }
 0x10c   :  { %331 = vmatprep.mubr.f32.mxu1 %v484_v0  ;;  %296 = vmatpush1.msra.mxu1 %v250_v19 }
 0x10d   :  { %297 = vmatprep.subr.mxu1 %v249_v20 }
 0x10e   :  { %298 = vmatpush1.msra.mxu1 %v248_v21 }
 0x1cb   :  { %v237_v23 = vpop.f32.mrf.mxu1 }
 0x1cc   :  { %v238_v24 = vadd.f32 %v359_v22, %v237_v23 }
 0x1cd   :  { %v384_v25 = vpop.f32.mrf.mxu1 }
 0x1ce   :  { %v241_v26 = vand.u32 2147483647, %v238_v24 }
 0x1d0   :  { %v242_v27 = vadd.f32 1.0, %v241_v26 }
 0x1d2   :  { %393 = vrcp.f32 %v242_v27 }
 0x1df   :  { %v394_v28 = vpop.eup %393 }
 0x1e0   :  { %v244_v29 = vmul.f32 %v394_v28, %v242_v27 }
 0x1e2   :  { %v245_v30 = vsub.f32 2.0, %v244_v29 }
 0x1e4   :  { %v246_v31 = vmul.f32 %v394_v28, %v245_v30 }
 0x1e6   :  { %v247_v32 = vmul.f32 %v246_v31, %v238_v24 }
 0x1e8   :  { %361 = vmatmul.mubr.msk.f32.vlgmr.msra.gmra.mxu1 %vm167_vm3, %v247_v32 }
 0x2a8   :  { %v333_v40 = vpop.f32.mrf.mxu1 }
 0x2a9   :  { %v334_v41 = vadd.f32 %v333_v40, %v257_v38 }
 0x2aa   :  { %v335_v42 = vpop.f32.mrf.mxu1 }
 0x2ab   :  { %338 = vst [vmem:[#allocation8] sm:$0xff] %v334_v41  ;;  %v336_v43 = vadd.f32 %v335_v42, %v261_v39 }
 0x2ad   :  { %339 = vst [vmem:[#allocation8 + $0x8] sm:$0xff] %v336_v43 }
 0x2ae   :  { %466 = shalt.err (!%p463_p5)
}
 0x2af   :  { %349 = dma.vmem_to_hbm [thread:$0]  %s347_s10, 256, %s578_s7, [#allocation4]  }
 0x2b0   :  { %479 = dma.done.wait [#allocation4], 256  }
 0x2b1   :  { %480 = vsyncadd [#allocation4], 4294967040 }
 0x2b2   :  { %353 = vsyncpa [#allocation3], 1 }
 0x2b3   :  { %354 = vsyncpa [#allocation6], 1 }
 0x2b4   :  { %355 = vsyncpa [#allocation4], 1 }

</bundles_post_ra>
